<compile_context>
chip_gen: v6e
topology: v6e:2x2x1
jax: 0.10.0
libtpu: 0.0.40
codegen_flags: <defaults>
</compile_context>

<pallas_src>
import math
import functools

import jax
import jax.numpy as jnp
from jax.experimental import pallas as pl
from jax.experimental.pallas import tpu as pltpu


# ----------------------------- common helpers ------------------------------

_VMEM_LIMIT = 64 * 1024 * 1024


def _cparams(n_axes):
    return pltpu.CompilerParams(
        dimension_semantics=("parallel",) * n_axes,
        vmem_limit_bytes=_VMEM_LIMIT)


def _rep_spec(shape):
    # Weight / bias block whose index never changes across the grid
    # (Pallas fetches it once and keeps it resident).
    return pl.BlockSpec(shape, lambda *_: (0,) * len(shape))


def _row_tile_spec(tile, width):
    # One (tile, width) slab of an (N, S, width) activation per (batch, seq-tile).
    return pl.BlockSpec((None, tile, width), lambda n, s: (n, s, 0))


# ----------------------------- in-kernel math -------------------------------

def _layernorm(x, g, b, eps=1e-5):
    mu = jnp.mean(x, axis=-1, keepdims=True)
    var = jnp.mean((x - mu) ** 2, axis=-1, keepdims=True)
    return (x - mu) * jax.lax.rsqrt(var + eps) * g + b


def _gelu_tanh(x):
    # tanh-form GELU: the transcendental goes to the EUP slot.
    c = math.sqrt(2.0 / math.pi)
    return 0.5 * x * (1.0 + jnp.tanh(c * (x + 0.044715 * x * x * x)))


def _softmax_last(x):
    m = jnp.max(x, axis=-1, keepdims=True)
    e = jnp.exp(x - m)
    return e * pl.reciprocal(jnp.sum(e, axis=-1, keepdims=True), approx=True)


# ----------------------------- decoder kernels ------------------------------

def ln_qkv_kernel(x_ref, g_ref, b_ref, w_ref, bias_ref, qkv_ref):
    # LN1 + fused QKV projection for one (seq_tile, E) slab.
    h = _layernorm(x_ref[...], g_ref[...], b_ref[...])            # (TS, E) f32
    qkv = jnp.dot(h.astype(jnp.bfloat16), w_ref[...],             # bf16 x bf16
                  preferred_element_type=jnp.float32) + bias_ref[...]
    qkv_ref[...] = qkv.astype(jnp.bfloat16)                       # (TS, 3E)


def attn_kernel(q_ref, k_ref, v_ref, mask_ref, o_ref, *, seq_tile):
    # All heads batched; q is one query tile, k/v are the full sequence.
    q = q_ref[...]                       # (H, TQ, Hd) bf16
    k = k_ref[...]                       # (H, S, Hd)  bf16
    v = v_ref[...]                       # (H, S, Hd)  bf16
    num_heads, tq, hd = q.shape
    s_len = k.shape[1]

    s = jnp.einsum('hqd,hkd->hqk', q, k,
                   preferred_element_type=jnp.float32) * (1.0 / math.sqrt(hd))

    # Causal mask rebuilt per query tile (no (S, S) materialization).
    q0 = pl.program_id(1) * seq_tile
    row = jax.lax.broadcasted_iota(jnp.int32, (tq, s_len), 0) + q0
    col = jax.lax.broadcasted_iota(jnp.int32, (tq, s_len), 1)
    s = jnp.where((row >= col)[None], s, jnp.float32(-10000.0))
    s = s + mask_ref[...][None]          # additive padding mask (1, 1, S)

    p = _softmax_last(s)                 # f32
    o = jnp.einsum('hqk,hkd->hqd', p.astype(jnp.bfloat16), v,
                   preferred_element_type=jnp.float32)
    o_ref[...] = o.astype(jnp.bfloat16)  # (H, TQ, Hd)


def proj_ffn_kernel(x_ref, ctx_ref, wo_ref, bo_ref, g2_ref, b2_ref,
                    w1_ref, b1_ref, w2_ref, b2b_ref, out_ref):
    # attention out-proj + residual + LN2 + FFN + residual for one query tile.
    x = x_ref[...]                                                # (TQ, E) f32
    attn = jnp.dot(ctx_ref[...], wo_ref[...],
                   preferred_element_type=jnp.float32) + bo_ref[...]
    x = x + attn

    h = _layernorm(x, g2_ref[...], b2_ref[...])
    ff = _gelu_tanh(jnp.dot(h.astype(jnp.bfloat16), w1_ref[...],
                            preferred_element_type=jnp.float32) + b1_ref[...])
    ff = jnp.dot(ff.astype(jnp.bfloat16), w2_ref[...],
                 preferred_element_type=jnp.float32) + b2b_ref[...]
    out_ref[...] = x + ff


def lm_head_kernel(x_ref, g_ref, b_ref, w_ref, out_ref):
    h = _layernorm(x_ref[...], g_ref[...], b_ref[...])
    out_ref[...] = jnp.dot(h.astype(jnp.bfloat16), w_ref[...],
                           preferred_element_type=jnp.float32)


# ----------------------------- pallas_call wrappers -------------------------

def _ln_qkv(x, g, b, w_bf16, bias, seq_tile):
    n, s, e = x.shape
    return pl.pallas_call(
        ln_qkv_kernel,
        out_shape=jax.ShapeDtypeStruct((n, s, 3 * e), jnp.bfloat16),
        grid=(n, s // seq_tile),
        in_specs=[
            _row_tile_spec(seq_tile, e),
            _rep_spec((1, e)), _rep_spec((1, e)),
            _rep_spec((e, 3 * e)), _rep_spec((1, 3 * e)),
        ],
        out_specs=_row_tile_spec(seq_tile, 3 * e),
        compiler_params=_cparams(2),
    )(x, g, b, w_bf16, bias)


def _attention(q4, k4, v4, mask, seq_tile):
    n, h, s, hd = q4.shape
    kern = functools.partial(attn_kernel, seq_tile=seq_tile)
    return pl.pallas_call(
        kern,
        out_shape=jax.ShapeDtypeStruct((n, h, s, hd), jnp.bfloat16),
        grid=(n, s // seq_tile),
        in_specs=[
            pl.BlockSpec((None, h, seq_tile, hd), lambda b, q: (b, 0, q, 0)),
            pl.BlockSpec((None, h, s, hd), lambda b, q: (b, 0, 0, 0)),
            pl.BlockSpec((None, h, s, hd), lambda b, q: (b, 0, 0, 0)),
            pl.BlockSpec((None, 1, s), lambda b, q: (b, 0, 0)),
        ],
        out_specs=pl.BlockSpec((None, h, seq_tile, hd), lambda b, q: (b, 0, q, 0)),
        compiler_params=_cparams(2),
    )(q4, k4, v4, mask)


def _proj_ffn(x, ctx, wo, bo, g2, b2, w1, b1, w2, b2b, seq_tile):
    n, s, e = x.shape
    inner = 4 * e
    return pl.pallas_call(
        proj_ffn_kernel,
        out_shape=jax.ShapeDtypeStruct((n, s, e), jnp.float32),
        grid=(n, s // seq_tile),
        in_specs=[
            _row_tile_spec(seq_tile, e),        # x (f32, residual)
            _row_tile_spec(seq_tile, e),        # attention context (bf16)
            _rep_spec((e, e)), _rep_spec((1, e)),
            _rep_spec((1, e)), _rep_spec((1, e)),
            _rep_spec((e, inner)), _rep_spec((1, inner)),
            _rep_spec((inner, e)), _rep_spec((1, e)),
        ],
        out_specs=_row_tile_spec(seq_tile, e),
        compiler_params=_cparams(2),
    )(x, ctx, wo, bo, g2, b2, w1, b1, w2, b2b)


def _lm_head(x, g, b, w_bf16, seq_tile, vocab_tile):
    n, s, e = x.shape
    v = w_bf16.shape[1]
    return pl.pallas_call(
        lm_head_kernel,
        out_shape=jax.ShapeDtypeStruct((n, s, v), jnp.float32),
        grid=(n, s // seq_tile, v // vocab_tile),
        in_specs=[
            pl.BlockSpec((None, seq_tile, e), lambda b, si, vi: (b, si, 0)),
            pl.BlockSpec((1, e), lambda b, si, vi: (0, 0)),
            pl.BlockSpec((1, e), lambda b, si, vi: (0, 0)),
            pl.BlockSpec((e, vocab_tile), lambda b, si, vi: (0, vi)),
        ],
        out_specs=pl.BlockSpec((None, seq_tile, vocab_tile),
                               lambda b, si, vi: (b, si, vi)),
        compiler_params=_cparams(3),
    )(x, g, b, w_bf16)


# ----------------------------- GPT-2 forward (Pallas) -----------------------

def gpt2_forward(gpt_params, input_ids, attention_ids, num_heads,
                 seq_tile=8, vocab_tile=128):
    n, s = input_ids.shape
    e = gpt_params["tok_emb"].shape[1]
    v = gpt_params["w_lm"].shape[1]
    assert e % num_heads == 0, "emb_dim must be divisible by num_heads"
    hd = e // num_heads
    if s % seq_tile != 0:
        seq_tile = s
    vocab_tile = min(vocab_tile, v)
    if v % vocab_tile != 0:
        vocab_tile = v

    # Embedding gathers (glue, plain JAX); dropout(p=0) -> identity.
    x = gpt_params["tok_emb"][input_ids] + gpt_params["pos_emb"][jnp.arange(s)][None]
    if attention_ids is None:
        mask = jnp.zeros((n, 1, s), jnp.float32)
    else:
        mask = (1.0 - attention_ids.astype(jnp.float32)).reshape(n, 1, s) * -10000.0

    bf = lambda w: w.astype(jnp.bfloat16)   # bf16 MXU operands, f32 accumulate

    for p in gpt_params["layers"]:
        qkv = _ln_qkv(x, p["ln1_g"], p["ln1_b"], bf(p["wqkv"]), p["bqkv"], seq_tile)
        # Head-major relayout (free-ish XLA reshape/transpose between kernels).
        qkv = qkv.reshape(n, s, 3, num_heads, hd).transpose(2, 0, 3, 1, 4)
        ctx4 = _attention(qkv[0], qkv[1], qkv[2], mask, seq_tile)     # (N,H,S,Hd)
        ctx = ctx4.transpose(0, 2, 1, 3).reshape(n, s, e)             # merge heads
        x = _proj_ffn(x, ctx, bf(p["wo"]), p["bo"], p["ln2_g"], p["ln2_b"],
                      bf(p["w1"]), p["b1"], bf(p["w2"]), p["b2"], seq_tile)

    return _lm_head(x, gpt_params["lnf_g"], gpt_params["lnf_b"],
                    bf(gpt_params["w_lm"]), seq_tile, vocab_tile)


# ----------------------------- emotion classifier (plain JAX) ---------------
# TODO(synk): the packed, variable-length bidirectional LSTM recurrence is a
# sequential, data-dependent scan with no clean Pallas TPU win at these sizes;
# it is kept in plain JAX (lax.scan) with pack_padded_sequence semantics.

def _masked_lstm(x, lens, w_ih, w_hh, b_ih, b_hh, reverse):
    n, t, _ = x.shape
    h_dim = w_hh.shape[1]

    def step(carry, inp):
        h, c = carry
        x_t, ti = inp
        gates = x_t @ w_ih.T + h @ w_hh.T + b_ih + b_hh
        i, f, g, o = jnp.split(gates, 4, axis=-1)
        i = jax.nn.sigmoid(i)
        f = jax.nn.sigmoid(f)
        g = jnp.tanh(g)
        o = jax.nn.sigmoid(o)
        c_new = f * c + i * g
        h_new = o * jnp.tanh(c_new)
        valid = (ti < lens)[:, None].astype(x.dtype)
        h = valid * h_new + (1.0 - valid) * h
        c = valid * c_new + (1.0 - valid) * c
        return (h, c), h * valid

    init = (jnp.zeros((n, h_dim), x.dtype), jnp.zeros((n, h_dim), x.dtype))
    xs = (jnp.swapaxes(x, 0, 1), jnp.arange(t))
    _, ys = jax.lax.scan(step, init, xs, reverse=reverse)
    return jnp.swapaxes(ys, 0, 1)          # (N, T, H), zeros at padded positions


def emo_classifier_forward(emo_params, input_embed, seq_len):
    out = input_embed
    for layer in emo_params["lstm"]:
        fwd = _masked_lstm(out, seq_len, layer["Wih_f"], layer["Whh_f"],
                           layer["bih_f"], layer["bhh_f"], reverse=False)
        bwd = _masked_lstm(out, seq_len, layer["Wih_b"], layer["Whh_b"],
                           layer["bih_b"], layer["bhh_b"], reverse=True)
        out = jnp.concatenate([fwd, bwd], axis=-1)
    last = out[:, -1, :]     # mirrors `out[:, -1, :]` after pad_packed_sequence
    return last @ emo_params["fc_w"].T + emo_params["fc_b"]


def inject_emotion_prompt(params, emo_logits, input_ids, attention_ids, emo_labels):
    n = input_ids.shape[0]
    emo_sel = jnp.argmax(emo_logits, axis=-1) if emo_labels is None else emo_labels
    emo_prompt = params["prompts"][emo_sel].astype(input_ids.dtype)
    emo_tok = jnp.full((n, 1), params["emo_token_id"], dtype=input_ids.dtype)
    new_ids = jnp.concatenate(
        [input_ids[:, :1], emo_tok, emo_prompt[:, None], input_ids[:, 1:]], axis=1)
    if attention_ids is None:
        return new_ids, None
    new_attn = jnp.concatenate(
        [attention_ids[:, :1], jnp.ones((n, 2), attention_ids.dtype),
         attention_ids[:, 1:]], axis=1)
    return new_ids, new_attn


def emogpt2_forward(params, q_ids, q_lens, input_ids, attention_ids, num_heads,
                    emo_labels=None):
    q_embs = params["gpt"]["tok_emb"][q_ids]            # dropout = identity
    emo_logits = emo_classifier_forward(params["emo"], q_embs, q_lens)
    new_ids, new_attn = inject_emotion_prompt(params, emo_logits, input_ids,
                                              attention_ids, emo_labels)
    lm_logits = gpt2_forward(params["gpt"], new_ids, new_attn, num_heads)
    return emo_logits, lm_logits


# ----------------------------- params init ----------------------------------

def init_params(key, vocab_size, emb_dim, max_seq_len, num_layers,
                emo_hidden, emo_classes, emo_lstm_layers):
    def normal(k, shape, std=0.02):
        return (std * jax.random.normal(k, shape)).astype(jnp.float32)

    keys = jax.random.split(key, 8)
    inner = 4 * emb_dim
    gpt = {
        "tok_emb": normal(keys[0], (vocab_size, emb_dim)),
        "pos_emb": normal(keys[1], (max_seq_len, emb_dim)),
        "w_lm": normal(keys[2], (emb_dim, vocab_size)),
        "lnf_g": jnp.ones((1, emb_dim), jnp.float32),
        "lnf_b": jnp.zeros((1, emb_dim), jnp.float32),
        "layers": [],
    }
    for lk in jax.random.split(keys[3], num_layers):
        ks = jax.random.split(lk, 4)
        gpt["layers"].append({
            "ln1_g": jnp.ones((1, emb_dim), jnp.float32),
            "ln1_b": jnp.zeros((1, emb_dim), jnp.float32),
            "wqkv": normal(ks[0], (emb_dim, 3 * emb_dim)),
            "bqkv": jnp.zeros((1, 3 * emb_dim), jnp.float32),
            "wo": normal(ks[1], (emb_dim, emb_dim)),
            "bo": jnp.zeros((1, emb_dim), jnp.float32),
            "ln2_g": jnp.ones((1, emb_dim), jnp.float32),
            "ln2_b": jnp.zeros((1, emb_dim), jnp.float32),
            "w1": normal(ks[2], (emb_dim, inner)),
            "b1": jnp.zeros((1, inner), jnp.float32),
            "w2": normal(ks[3], (inner, emb_dim)),
            "b2": jnp.zeros((1, emb_dim), jnp.float32),
        })

    emo = {"lstm": [],
           "fc_w": normal(keys[4], (emo_classes, 2 * emo_hidden)),
           "fc_b": jnp.zeros((emo_classes,), jnp.float32)}
    in_dim = emb_dim
    for lk in jax.random.split(keys[5], emo_lstm_layers):
        ks = jax.random.split(lk, 4)
        emo["lstm"].append({
            "Wih_f": normal(ks[0], (4 * emo_hidden, in_dim), 0.1),
            "Whh_f": normal(ks[1], (4 * emo_hidden, emo_hidden), 0.1),
            "bih_f": jnp.zeros((4 * emo_hidden,), jnp.float32),
            "bhh_f": jnp.zeros((4 * emo_hidden,), jnp.float32),
            "Wih_b": normal(ks[2], (4 * emo_hidden, in_dim), 0.1),
            "Whh_b": normal(ks[3], (4 * emo_hidden, emo_hidden), 0.1),
            "bih_b": jnp.zeros((4 * emo_hidden,), jnp.float32),
            "bhh_b": jnp.zeros((4 * emo_hidden,), jnp.float32),
        })
        in_dim = 2 * emo_hidden

    return {"gpt": gpt, "emo": emo,
            "prompts": jnp.arange(100, 100 + emo_classes, dtype=jnp.int32),
            "emo_token_id": 4}


# ----------------------------- pure-JAX reference ---------------------------

def _ref_ln(x, g, b, eps=1e-5):
    mu = jnp.mean(x, axis=-1, keepdims=True)
    var = jnp.mean((x - mu) ** 2, axis=-1, keepdims=True)
    return (x - mu) / jnp.sqrt(var + eps) * g + b


def ref_gpt2_forward(gp, input_ids, attention_ids, num_heads):
    n, s = input_ids.shape
    e = gp["tok_emb"].shape[1]
    hd = e // num_heads
    x = gp["tok_emb"][input_ids] + gp["pos_emb"][jnp.arange(s)][None]
    mask = (1.0 - attention_ids.astype(jnp.float32)).reshape(n, 1, 1, s) * -10000.0
    causal = jnp.tril(jnp.ones((s, s), bool))
    for p in gp["layers"]:
        h = _ref_ln(x, p["ln1_g"], p["ln1_b"])
        qkv = h @ p["wqkv"] + p["bqkv"]
        q, k, v = jnp.split(qkv, 3, axis=-1)
        sh = lambda t: t.reshape(n, s, num_heads, hd).transpose(0, 2, 1, 3)
        q, k, v = sh(q), sh(k), sh(v)
        sc = jnp.einsum("nhqd,nhkd->nhqk", q, k,
                        precision=jax.lax.Precision.HIGHEST) / math.sqrt(hd)
        sc = jnp.where(causal[None, None], sc, jnp.float32(-10000.0)) + mask
        a = jax.nn.softmax(sc, axis=-1)
        o = jnp.einsum("nhqk,nhkd->nhqd", a, v, precision=jax.lax.Precision.HIGHEST)
        o = o.transpose(0, 2, 1, 3).reshape(n, s, e)
        x = x + (o @ p["wo"] + p["bo"])
        h2 = _ref_ln(x, p["ln2_g"], p["ln2_b"])
        ff = jax.nn.gelu(h2 @ p["w1"] + p["b1"], approximate=False)
        x = x + (ff @ p["w2"] + p["b2"])
    return _ref_ln(x, gp["lnf_g"], gp["lnf_b"]) @ gp["w_lm"]


# ----------------------------- main ------------------------------------------

if __name__ == "__main__":
    vocab_size, emb_dim, max_seq_len = 256, 256, 32
    num_heads, num_layers = 2, 2
    emo_hidden, emo_classes, emo_lstm_layers = 64, 6, 1
    N, S_in, S_q = 2, 14, 10

    key = jax.random.PRNGKey(0)
    kp, k1, k2 = jax.random.split(key, 3)
    params = init_params(kp, vocab_size, emb_dim, max_seq_len, num_layers,
                         emo_hidden, emo_classes, emo_lstm_layers)

    q_ids = jax.random.randint(k1, (N, S_q), 0, vocab_size, dtype=jnp.int32)
    q_lens = jnp.array([S_q, 7], dtype=jnp.int32)
    input_ids = jax.random.randint(k2, (N, S_in), 0, vocab_size, dtype=jnp.int32)
    attention_ids = jnp.concatenate(
        [jnp.ones((1, S_in), jnp.int32),
         jnp.concatenate([jnp.ones((1, 10), jnp.int32),
                          jnp.zeros((1, S_in - 10), jnp.int32)], axis=1)], axis=0)

    emo_logits, lm_logits = emogpt2_forward(
        params, q_ids, q_lens, input_ids, attention_ids, num_heads)
    emo_logits, lm_logits = jax.block_until_ready((emo_logits, lm_logits))

    assert emo_logits.shape == (N, emo_classes), emo_logits.shape
    assert lm_logits.shape == (N, S_in + 2, vocab_size), lm_logits.shape

    # Reference-check the Pallas GPT-2 path (bf16 MXU vs f32 reference).
    ext_ids, ext_attn = inject_emotion_prompt(params, emo_logits, input_ids,
                                              attention_ids, None)
    with jax.default_matmul_precision("highest"):
        ref = ref_gpt2_forward(params["gpt"], ext_ids, ext_attn, num_heads)
    ref = jax.block_until_ready(ref)
    max_diff = float(jnp.max(jnp.abs(lm_logits - ref)))
    if not jnp.allclose(lm_logits, ref, atol=2e-2, rtol=2e-2):
        raise AssertionError(
            f"Pallas GPT-2 output mismatch vs reference, max abs diff = {max_diff}")

    print("KERNEL_OK")
</pallas_src>

<mosaic_0001>
module attributes {stable_mosaic.version = 11 : i64} {
  func.func @ln_qkv_kernel(%arg0: i32, %arg1: i32, %arg2: memref<1x8x256xf32, #tpu.memory_space<vmem>>, %arg3: memref<1x256xf32, #tpu.memory_space<vmem>>, %arg4: memref<1x256xf32, #tpu.memory_space<vmem>>, %arg5: memref<256x768xbf16, #tpu.memory_space<vmem>>, %arg6: memref<1x768xf32, #tpu.memory_space<vmem>>, %arg7: memref<1x8x768xbf16, #tpu.memory_space<vmem>>) attributes {dimension_semantics = [#tpu.dimension_semantics<parallel>, #tpu.dimension_semantics<parallel>], iteration_bounds = array<i64: 2, 2>, scalar_prefetch = 0 : i64, scratch_operands = 0 : i64, tpu.core_type = #tpu.core_type<tc>, window_params = [{transform_indices = @transform_0, window_bounds = array<i64: 1, 8, 256>}, {pipeline_mode = #tpu.pipeline_mode<synchronous>, transform_indices = @transform_1, window_bounds = array<i64: 1, 256>}, {pipeline_mode = #tpu.pipeline_mode<synchronous>, transform_indices = @transform_2, window_bounds = array<i64: 1, 256>}, {pipeline_mode = #tpu.pipeline_mode<synchronous>, transform_indices = @transform_3, window_bounds = array<i64: 256, 768>}, {pipeline_mode = #tpu.pipeline_mode<synchronous>, transform_indices = @transform_4, window_bounds = array<i64: 1, 768>}, {transform_indices = @transform_5, window_bounds = array<i64: 1, 8, 768>}]} {
    %c0 = arith.constant 0 : index
    %c0_0 = arith.constant 0 : index
    %c0_1 = arith.constant 0 : index
    %0 = vector.load %arg2[%c0, %c0_0, %c0_1] : memref<1x8x256xf32, #tpu.memory_space<vmem>>, vector<1x8x256xf32>
    %1 = vector.shape_cast %0 : vector<1x8x256xf32> to vector<8x256xf32>
    %c0_2 = arith.constant 0 : index
    %c0_3 = arith.constant 0 : index
    %2 = vector.load %arg3[%c0_2, %c0_3] : memref<1x256xf32, #tpu.memory_space<vmem>>, vector<1x256xf32>
    %c0_4 = arith.constant 0 : index
    %c0_5 = arith.constant 0 : index
    %3 = vector.load %arg4[%c0_4, %c0_5] : memref<1x256xf32, #tpu.memory_space<vmem>>, vector<1x256xf32>
    %cst = arith.constant dense<0.000000e+00> : vector<8xf32>
    %4 = vector.multi_reduction <add>, %1, %cst [1] : vector<8x256xf32> to vector<8xf32>
    %5 = vector.shape_cast %4 : vector<8xf32> to vector<8x1xf32>
    %cst_6 = arith.constant 2.560000e+02 : f32
    %6 = vector.broadcast %cst_6 : f32 to vector<8x1xf32>
    %7 = arith.divf %5, %6 : vector<8x1xf32>
    %8 = vector.broadcast %7 : vector<8x1xf32> to vector<8x256xf32>
    %9 = arith.subf %1, %8 : vector<8x256xf32>
    %10 = arith.mulf %9, %9 : vector<8x256xf32>
    %cst_7 = arith.constant dense<0.000000e+00> : vector<8xf32>
    %11 = vector.multi_reduction <add>, %10, %cst_7 [1] : vector<8x256xf32> to vector<8xf32>
    %12 = vector.shape_cast %11 : vector<8xf32> to vector<8x1xf32>
    %cst_8 = arith.constant 2.560000e+02 : f32
    %13 = vector.broadcast %cst_8 : f32 to vector<8x1xf32>
    %14 = arith.divf %12, %13 : vector<8x1xf32>
    %15 = vector.broadcast %7 : vector<8x1xf32> to vector<8x256xf32>
    %16 = arith.subf %1, %15 : vector<8x256xf32>
    %cst_9 = arith.constant 9.99999974E-6 : f32
    %17 = vector.broadcast %cst_9 : f32 to vector<8x1xf32>
    %18 = arith.addf %14, %17 : vector<8x1xf32>
    %19 = math.rsqrt %18 : vector<8x1xf32>
    %20 = vector.broadcast %19 : vector<8x1xf32> to vector<8x256xf32>
    %21 = arith.mulf %16, %20 : vector<8x256xf32>
    %22 = vector.broadcast %2 : vector<1x256xf32> to vector<8x256xf32>
    %23 = arith.mulf %21, %22 : vector<8x256xf32>
    %24 = vector.broadcast %3 : vector<1x256xf32> to vector<8x256xf32>
    %25 = arith.addf %23, %24 : vector<8x256xf32>
    %26 = arith.truncf %25 : vector<8x256xf32> to vector<8x256xbf16>
    %c0_10 = arith.constant 0 : index
    %c0_11 = arith.constant 0 : index
    %27 = vector.load %arg5[%c0_10, %c0_11] : memref<256x768xbf16, #tpu.memory_space<vmem>>, vector<256x768xbf16>
    %cst_12 = arith.constant dense<0.000000e+00> : vector<8x768xf32>
    %28 = tpu.matmul %26, %27, %cst_12 {dimension_numbers = #tpu.dot_dimension_numbers<[1], [0], [0], [1], [0, 0, 1, 1], [], []>} : vector<8x256xbf16>, vector<256x768xbf16>, vector<8x768xf32> -> vector<8x768xf32>
    %c0_13 = arith.constant 0 : index
    %c0_14 = arith.constant 0 : index
    %29 = vector.load %arg6[%c0_13, %c0_14] : memref<1x768xf32, #tpu.memory_space<vmem>>, vector<1x768xf32>
    %30 = vector.broadcast %29 : vector<1x768xf32> to vector<8x768xf32>
    %31 = arith.addf %28, %30 : vector<8x768xf32>
    %32 = arith.truncf %31 : vector<8x768xf32> to vector<8x768xbf16>
    %c0_15 = arith.constant 0 : index
    %c0_16 = arith.constant 0 : index
    %c0_17 = arith.constant 0 : index
    %33 = vector.load %arg7[%c0_15, %c0_16, %c0_17] : memref<1x8x768xbf16, #tpu.memory_space<vmem>>, vector<1x8x768xbf16>
    %34 = vector.shape_cast %33 : vector<1x8x768xbf16> to vector<8x768xbf16>
    %35 = vector.shape_cast %32 : vector<8x768xbf16> to vector<1x8x768xbf16>
    tpu.vector_store %arg7[%c0_15, %c0_16, %c0_17], %35 {strides = array<i32>} : memref<1x8x768xbf16, #tpu.memory_space<vmem>>, vector<1x8x768xbf16>,
    return
  }
  func.func @transform_0(%arg0: i32, %arg1: i32) -> (i32, i32, i32) {
    %c0_i32 = arith.constant 0 : i32
    %c0_i32_0 = arith.constant 0 : i32
    return %arg0, %arg1, %c0_i32 : i32, i32, i32
  }
  func.func @transform_1(%arg0: i32, %arg1: i32) -> (i32, i32) {
    %c0_i32 = arith.constant 0 : i32
    %c0_i32_0 = arith.constant 0 : i32
    %c0_i32_1 = arith.constant 0 : i32
    return %c0_i32, %c0_i32_0 : i32, i32
  }
  func.func @transform_2(%arg0: i32, %arg1: i32) -> (i32, i32) {
    %c0_i32 = arith.constant 0 : i32
    %c0_i32_0 = arith.constant 0 : i32
    %c0_i32_1 = arith.constant 0 : i32
    return %c0_i32, %c0_i32_0 : i32, i32
  }
  func.func @transform_3(%arg0: i32, %arg1: i32) -> (i32, i32) {
    %c0_i32 = arith.constant 0 : i32
    %c0_i32_0 = arith.constant 0 : i32
    %c0_i32_1 = arith.constant 0 : i32
    return %c0_i32, %c0_i32_0 : i32, i32
  }
  func.func @transform_4(%arg0: i32, %arg1: i32) -> (i32, i32) {
    %c0_i32 = arith.constant 0 : i32
    %c0_i32_0 = arith.constant 0 : i32
    %c0_i32_1 = arith.constant 0 : i32
    return %c0_i32, %c0_i32_0 : i32, i32
  }
  func.func @transform_5(%arg0: i32, %arg1: i32) -> (i32, i32, i32) {
    %c0_i32 = arith.constant 0 : i32
    %c0_i32_0 = arith.constant 0 : i32
    return %arg0, %arg1, %c0_i32 : i32, i32, i32
  }
}

</mosaic_0001>

<bundles_post_ra>
// kernel: tpu_custom_call.1
= control target key start
LH: loop header
LB: loop body
LE: loop exit
PB: predicated region body
PF: predicated region fallthrough
CT: control target
= control target key end

     0   :  { %s2141_s0 = inlined_call_operand.hbm [shape: f32[2,16,256], index: 0, kind: input, shape index: {}]   ;;  %s2142_s1 = inlined_call_operand.hbm [shape: f32[1,256], index: 1, kind: input, shape index: {}]   ;;  %s2143_s2 = inlined_call_operand.hbm [shape: f32[1,256], index: 2, kind: input, shape index: {}]   ;;  %s2144_s3 = inlined_call_operand.hbm [shape: bf16[256,768], index: 3, kind: input, shape index: {}]   ;;  %s2145_s4 = inlined_call_operand.vmem [shape: f32[1,768], index: 4, kind: input, shape index: {}]   ;;  %s2146_s5 = inlined_call_operand.hbm [shape: bf16[2,16,768], index: 5, kind: output, shape index: {}]  }
   0x1   :  { %2155 = sst [smem:[#allocation19_spill]] %s2142_s1 }
   0x2   :  { %2156 = sst [smem:[#allocation20_spill]] %s2143_s2 }
   0x3   :  { %2157 = sst [smem:[#allocation21_spill]] %s2144_s3 }
   0x4   :  { %10 = vsyncpa [#allocation3], 0 }
   0x5   :  { %12 = vsyncpa [#allocation3 + $0x1], 0 }
   0x6   :  { %13 = vsyncpa [#allocation6], 0 }
   0x7   :  { %14 = vsyncpa [#allocation9], 0 }
   0x8   :  { %15 = vsyncpa [#allocation4], 0 }
   0x9   :  { %17 = vsyncpa [#allocation4 + $0x1], 0  ;;  %s1869_s18 = smov 0   ;;  %s1871_s19 = smov 0  }
   0xa   :  { %s1873_s20 = smov 0   ;;  %s1875_s21 = smov 0  }
   0xb   :  { %s1877_s22 = smov 0   ;;  %s1879_s23 = smov 0  }
   0xc   :  { %s1881_s24 = smov 0   ;;  %s1883_s25 = smov 0  }
   0xd LB: > { %2158 = sst [smem:[#allocation15_spill]] %s1802_s18  ;;  %s1239_s26 = sadd.s32 4294967295, %s1830_s25   ;;  %s1830_s25 = sphi %s1883_s25, %s23_s25   ;;  %s1826_s24 = sphi %s1881_s24, %s2187_s24   ;;  %s1822_s23 = sphi %s1879_s23, %s2182_s23   ;;  %s1818_s22 = sphi %s1877_s22, %s2186_s22   ;;  %s1814_s21 = sphi %s1875_s21, %s2181_s21   ;;  %s1810_s20 = sphi %s1873_s20, %s2185_s20   ;;  %s1806_s19 = sphi %s1871_s19, %s2184_s19   ;;  %s1802_s18 = sphi %s1869_s18, %s2183_s18  }
   0xe   : > { %2159 = sst [smem:[#allocation16_spill]] %s1822_s23  ;;  %s1240_s27 = sadd.s32 4294967294, %s1830_s25  }
   0xf   : > { %p57_p0 = scmp.ne.s32.totalorder %s1806_s19, %s1802_s18  ;;  %p1913_p1 = scmp.eq.s32.totalorder %s1239_s26, 0 }
  0x10   : > { %p1917_p2 = scmp.eq.s32.totalorder %s1239_s26, 3  ;;  %p173_p3 = scmp.eq.s32.totalorder %s1240_s27, 3 }
  0x11   : > { %s2160_s28 = scalar_select %p1913_p1, 1, 0 }
  0x12   : > { %s2161_s29 = scalar_select %p1917_p2, 1, 0 }
  0x13   : > { %p1923_p4 = por %p1913_p1, %p57_p0  ;;  %p1241_p5 = scmp.ge.s32.totalorder %s1830_s25, 1 }
  0x14   : > { %p1928_p6 = por %p173_p3, %p57_p0  ;;  %p180_p7 = scmp.lt.s32.totalorder %s1830_s25, 5 }
  0x15   : > { %s2162_s30 = scalar_select %p1923_p4, 1, 0 }
  0x16   : > { %s2163_s6 = scalar_select %p1928_p6, 1, 0 }
  0x17   : > { %p1933_p8 = pnand %p1241_p5, %p180_p7  ;;  %s1832_s8 = smov [#allocation5]  }
  0x18   : > { %2164 = sst [smem:[#allocation17_spill]] %s2163_s6  ;;  %s193_s9 = sshll.u32 %s1832_s8, 4  ;;  %s194_s9 = int_to_ptr.vmem [resolvable:$true] %s193_s9 }
  0x19   : > { %s2165_s7 = scalar_select %p1933_p8, 1, 0 }
  0x1a   : > { %p1379_p9 = pneg %p1933_p8  ;;  %s1833_s10 = smov [#allocation7]  }
  0x1b   : > { %s204_s11 = sshll.u32 %s1833_s10, 4  ;;  %s1834_s13 = smov [#allocation8]   ;;  %s205_s11 = int_to_ptr.vmem [resolvable:$true] %s204_s11 }
  0x1c   : > { %p1941_p10 = pnand %p1379_p9, %p1913_p1  ;;  %s214_s14 = sshll.u32 %s1834_s13, 4  ;;  %s1945_s14 = int_to_ptr.vmem [resolvable:$true] %s214_s14 }
  0x1d   : > { %s1631_s15 = scalar_lea.vmem %s194_s9, 32  ;;  %p1639_p3 = scmp.lt.s32.totalorder %s194_s9, %s194_s9 }
  0x1e   : > { %p1622_p11 = pneg %p1941_p10  ;;  %p1632_p12 = scmp.ne.s32.totalorder %s194_s9, %s1631_s15 }
  0x1f   : > { %p1640_p5 = scmp.lt.s32.totalorder %s1631_s15, %s1631_s15 }
  0x20   : > { %p1634_p13 = pnand %p1632_p12, %p1622_p11 }
  0x21   : > { %p1641_p7 = por %p1640_p5, %p1639_p3 }
  0x22   : > { %p1635_p0 = pneg %p1634_p13 }
  0x24   : > { %p1642_p9 = pnand %p1641_p7, %p1635_p0 }
  0x26   : > { %1645 = shalt.err (!%p1642_p9)
}
  0x27   : > { %s2167_s1 = sld [smem:[#allocation19_spill]]  ;;  %s1657_s26 = scalar_lea.vmem %s205_s11, 32 }
  0x28   : > { %p1658_p6 = scmp.ne.s32.totalorder %s205_s11, %s1657_s26  ;;  %p1665_p12 = scmp.lt.s32.totalorder %s205_s11, %s205_s11 }
  0x29   : > { %p1666_p13 = scmp.lt.s32.totalorder %s1657_s26, %s1657_s26 }
  0x2a   : > { %p1660_p1 = pnand %p1658_p6, %p1622_p11 }
  0x2b   : > { %p1667_p8 = por %p1666_p13, %p1665_p12 }
  0x2c   : > { %p1661_p4 = pneg %p1660_p1 }
  0x2d   : > { %1382 = dma.hbm_to_vmem [thread:$0]  (!%p1941_p10), %s2167_s1, 32, %s194_s9, [#allocation6]  }
  0x2e   : > { %p1668_p2 = pnand %p1667_p8, %p1661_p4 }
  0x30   : > { %1671 = shalt.err (!%p1668_p2)
}
  0x31   : > { %s2168_s2 = sld [smem:[#allocation20_spill]]  ;;  %s1683_s9 = scalar_lea.vmem %s1945_s14, 12288 }
  0x32   : > { %p1684_p0 = scmp.ne.s32.totalorder %s1945_s14, %s1683_s9  ;;  %p1691_p3 = scmp.lt.s32.totalorder %s1945_s14, %s1945_s14 }
  0x33   : > { %p1692_p4 = scmp.lt.s32.totalorder %s1683_s9, %s1683_s9 }
  0x34   : > { %p1686_p1 = pnand %p1684_p0, %p1622_p11 }
  0x35   : > { %p1693_p2 = por %p1692_p4, %p1691_p3 }
  0x36   : > { %p1687_p6 = pneg %p1686_p1 }
  0x37   : > { %1385 = dma.hbm_to_vmem [thread:$0]  (!%p1941_p10), %s2168_s2, 32, %s205_s11, [#allocation6]  }
  0x38   : > { %p1694_p8 = pnand %p1693_p2, %p1687_p6 }
  0x3a   : > { %1697 = shalt.err (!%p1694_p8)
}
  0x3b   : > { %s1835_s10 = smov 384   ;;  %s1836_s11 = smov 24  }
  0x3c   : > { %s2169_s3 = sld [smem:[#allocation21_spill]]  ;;  %s32_s16 = sadd.s32 1, %s1822_s23 }
  0x3d   : > { %p33_p11 = scmp.ge.s32.totalorder %s32_s16, 2  ;;  %s35_s17 = sadd.s32 1, %s1826_s24 }
  0x3e   : > { %s44_s26 = sadd.s32 1, %s1810_s20  ;;  %p51_p5 = scmp.ne.s32.totalorder %s1810_s20, %s1806_s19 }
  0x3f   : > { %s2189_s16 = smov (%p33_p11, %s32_s16), 0  ;;  %s2191_s17 = smov (!%p33_p11, %s35_s17), %s1826_s24 }
  0x40   : > { %2170 = sst [smem:[#allocation18_spill]] %s2189_s16  ;;  %s40_s27 = ssub.s32 %s1822_s23, %s2189_s16 }
  0x41   : > { %p52_p7 = scmp.eq.s32.totalorder %s1830_s25, 0  ;;  %p37_p9 = scmp.ge.s32.totalorder %s2191_s17, 2 }
  0x42   : > { %1388 = dma.hbm_to_vmem [thread:$0]  (!%p1941_p10), %s2169_s3, 12288, %s1945_s14, [#allocation9], %s1835_s10, %s1835_s10, %s1836_s11  }
  0x43   : > { %p2171_p12 = scmp.ne.s32.totalorder %s2161_s29, 0  ;;  %p1995_p10 = por %p52_p7, %p51_p5 }
  0x44   : > { %p1400_p0 = scmp.lt.s32.totalorder %s1830_s25, 4  ;;  %s2193_s17 = smov (%p37_p9, %s2191_s17), 0 }
  0x45   : > { %p1991_p13 = por %p2171_p12, %p51_p5  ;;  %s231_s8 = sand.u32 1, %s1810_s20  }
  0x46   : > { %s1247_s9 = sshll.u32 %s1822_s23, 1  ;;  %s39_s10 = ssub.s32 %s1826_s24, %s2193_s17 }
  0x47   : > { %s41_s11 = sor.u32 %s40_s27, %s39_s10  ;;  %s1246_s13 = sshll.u32 %s231_s8, 4 }
  0x48   : > { %p42_p1 = scmp.eq.s32.totalorder %s41_s11, 0  ;;  %s1248_s29 = sshll.u32 %s1826_s24, 2 }
  0x49   : > { %s235_s15 = scalar_lea.vmem [#allocation2], %s1246_s13  ;;  %s241_s3 = sadd.s32 %s1248_s29, %s1247_s9 }
  0x4a   : > { %s245_s1 = sshll.u32 %s235_s15, 4  ;;  %s1249_s16 = sshll.u32 %s241_s3, 7  ;;  %s246_s1 = int_to_ptr.vmem [resolvable:$true] %s245_s1 }
  0x4b   : > { %s2008_s2 = scalar_select %p42_p1, %s1810_s20, %s44_s26  }
  0x4c   : > { %p2014_p6 = pnand %p1400_p0, %p1995_p10  ;;  %s243_s27 = scalar_lea.hbm %s2141_s0, %s1249_s16 }
  0x4d   : > { %s232_s10 = scalar_lea.sflag [#allocation3], %s231_s8  ;;  %s1711_s11 = scalar_lea.vmem %s246_s1, 256 }
  0x4e   : > { %p1700_p3 = pneg %p2014_p6  ;;  %p1712_p4 = scmp.ne.s32.totalorder %s246_s1, %s1711_s11 }
  0x4f   : > { %s1837_s26 = smov [#allocation2]  }
  0x50   : > { %p1714_p2 = pnand %p1712_p4, %p1700_p3  ;;  %s1716_s3 = sshll.u32 %s1837_s26, 4  ;;  %s1717_s3 = int_to_ptr.vmem [resolvable:$false] %s1716_s3 }
  0x51   : > { %s1718_s14 = scalar_lea.vmem %s1717_s3, 512  ;;  %p1719_p11 = scmp.lt.s32.totalorder %s246_s1, %s1717_s3 }
  0x52   : > { %p1715_p8 = pneg %p1714_p2  ;;  %p1720_p5 = scmp.lt.s32.totalorder %s1718_s14, %s1711_s11 }
  0x54   : > { %p1721_p7 = por %p1720_p5, %p1719_p11 }
  0x56   : > { %p1722_p9 = pnand %p1721_p7, %p1715_p8 }
  0x58   : > { %1725 = shalt.err (!%p1722_p9)
}
  0x59   : > { %1392 = dma.hbm_to_vmem [thread:$0]  (!%p2014_p6), %s243_s27, 256, %s246_s1, %s232_s10  }
  0x5a   : > { %p2175_p12 = scmp.ne.s32.totalorder %s2165_s7, 0 }
  0x5b   : > { %s2028_s18 = sand.u32 (!%p2175_p12), 1, %s1806_s19   ;;  %p2176_p10 = scmp.ne.s32.totalorder (!%p2175_p12), %s2162_s30, 0 }
  0x5c   : > { %254 = sbr.rel (%p2175_p12) target bundleno = 693 (0x2b5), region = 40  ;;  %s1251_s23 = sshll.u32 (!%p2175_p12), %s2028_s18, 4 }
  0x5d   : > { %s257_s16 = scalar_lea.sflag (!%p2175_p12), [#allocation3], %s2028_s18  ;;  %s260_s8 = scalar_lea.vmem (!%p2175_p12), [#allocation2], %s1251_s23 }
  0x61   : > { %1785 = dma.done.wait (%p2176_p10), %s257_s16, 256  }
  0x62   : > { %1787 = vsyncadd (%p2176_p10), %s257_s16, 4294967040  ;;  %p2177_p0 = scmp.ne.s32.totalorder %s2160_s28, 0 }
  0x64   : > { %1789 = dma.done.wait (%p2177_p0), [#allocation6], 64  }
  0x65   : > { %1791 = vsyncadd (%p2177_p0), [#allocation6], 4294967232 }
  0x66   : > { %1793 = dma.done.wait (%p2177_p0), [#allocation9], 12288  }
  0x67   : > { %1795 = vsyncadd (%p2177_p0), [#allocation9], 4294955008  ;;  %v2044_v0 = vld [vmem:[%s260_s8] sm:$0xff]  ;;  %v2046_v1 = vld [vmem:[%s260_s8 + $0x8] sm:$0xff]  ;;  %s1360_s30 = smul.u32 24, %s2028_s18  ;;  %s1838_s26 = smov [#allocation10]  }
  0x68   : > { %v303_v2 = vadd.f32 %v2046_v1, %v2044_v0  ;;  %v1474_v3 = vld [vmem:[#allocation8 + $0x154] ss:$24 sps:$4 sm:$0xff]   ;;  %v1476_v4 = vld [vmem:[#allocation8 + $0x150] ss:$24 sps:$4 sm:$0xff]   ;;  %v1480_v7 = vld [vmem:[#allocation8 + $0x124] ss:$24 sps:$4 sm:$0xff]  }
  0x69   : > { %v1477_v5 = vld [vmem:[#allocation8 + $0x15c] ss:$24 sps:$4 sm:$0xff]   ;;  %v1479_v6 = vld [vmem:[#allocation8 + $0x158] ss:$24 sps:$4 sm:$0xff]   ;;  %956 = vmatprep.subr.bf16.mxu0 %v1474_v3  ;;  %v1483_v8 = vld [vmem:[#allocation8 + $0x12c] ss:$24 sps:$4 sm:$0xff]  }
  0x6a   : > { %304 = vadd.xlane.f32.xlu0 %v303_v2  ;;  %997 = vmatprep.subr.bf16.mxu1 %v1477_v5  ;;  %v1482_v9 = vld [vmem:[#allocation8 + $0x120] ss:$24 sps:$4 sm:$0xff]   ;;  %v1486_v11 = vld [vmem:[#allocation8 + $0xf4] ss:$24 sps:$4 sm:$0xff]   ;;  %v1488_v13 = vld [vmem:[#allocation8 + $0xf0] ss:$24 sps:$4 sm:$0xff]  }
  0x6b   : > { %957 = vmatpush1.bf16.msra.mxu0 %v1476_v4  ;;  %998 = vmatpush1.bf16.msra.mxu1 %v1479_v6  ;;  %v1485_v10 = vld [vmem:[#allocation8 + $0x128] ss:$24 sps:$4 sm:$0xff]   ;;  %v1489_v12 = vld [vmem:[#allocation8 + $0xfc] ss:$24 sps:$4 sm:$0xff]   ;;  %v1491_v14 = vld [vmem:[#allocation8 + $0xf8] ss:$24 sps:$4 sm:$0xff]  }
  0x6c   : > { %958 = vmatprep.subr.bf16.mxu0 %v1480_v7  ;;  %999 = vmatprep.subr.bf16.mxu1 %v1483_v8  ;;  %v1492_v15 = vld [vmem:[#allocation8 + $0xc4] ss:$24 sps:$4 sm:$0xff]   ;;  %v1494_v17 = vld [vmem:[#allocation8 + $0xc0] ss:$24 sps:$4 sm:$0xff]   ;;  %v1498_v19 = vld [vmem:[#allocation8 + $0x94] ss:$24 sps:$4 sm:$0xff]  }
  0x6d   : > { %v1495_v16 = vld [vmem:[#allocation8 + $0xcc] ss:$24 sps:$4 sm:$0xff]   ;;  %v1497_v18 = vld [vmem:[#allocation8 + $0xc8] ss:$24 sps:$4 sm:$0xff]   ;;  %v1501_v20 = vld [vmem:[#allocation8 + $0x9c] ss:$24 sps:$4 sm:$0xff]  }
  0x6e   : > { %v1500_v21 = vld [vmem:[#allocation8 + $0x90] ss:$24 sps:$4 sm:$0xff]   ;;  %v1504_v23 = vld [vmem:[#allocation8 + $0x64] ss:$24 sps:$4 sm:$0xff]   ;;  %v1506_v25 = vld [vmem:[#allocation8 + $0x60] ss:$24 sps:$4 sm:$0xff]  }
  0x6f   : > { %959 = vmatpush1.bf16.msra.mxu0 %v1482_v9  ;;  %1000 = vmatpush1.bf16.msra.mxu1 %v1485_v10  ;;  %v1503_v22 = vld [vmem:[#allocation8 + $0x98] ss:$24 sps:$4 sm:$0xff]   ;;  %v1507_v24 = vld [vmem:[#allocation8 + $0x6c] ss:$24 sps:$4 sm:$0xff]   ;;  %v1509_v26 = vld [vmem:[#allocation8 + $0x68] ss:$24 sps:$4 sm:$0xff]  }
  0x70   : > { %960 = vmatprep.subr.bf16.mxu0 %v1486_v11  ;;  %1001 = vmatprep.subr.bf16.mxu1 %v1489_v12  ;;  %v1510_v27 = vld [vmem:[#allocation8 + $0x34] ss:$24 sps:$4 sm:$0xff]   ;;  %v1512_v29 = vld [vmem:[#allocation8 + $0x30] ss:$24 sps:$4 sm:$0xff]   ;;  %v1516_v31 = vld [vmem:[#allocation8 + $0x4] ss:$24 sps:$4 sm:$0xff]  }
  0x71   : > { %v1513_v28 = vld [vmem:[#allocation8 + $0x3c] ss:$24 sps:$4 sm:$0xff]   ;;  %v1515_v30 = vld [vmem:[#allocation8 + $0x38] ss:$24 sps:$4 sm:$0xff]   ;;  %v1519_v32 = vld [vmem:[#allocation8 + $0xc] ss:$24 sps:$4 sm:$0xff]  }
  0x72   : > { %v1518_v33 = vld [vmem:[#allocation8] ss:$24 sps:$4 sm:$0xff]   ;;  %v1522_v35 = vld [vmem:[#allocation8 + $0x2d4] ss:$24 sps:$4 sm:$0xff]   ;;  %v1524_v37 = vld [vmem:[#allocation8 + $0x2d0] ss:$24 sps:$4 sm:$0xff]  }
  0x73   : > { %961 = vmatpush1.bf16.msra.mxu0 %v1488_v13  ;;  %1002 = vmatpush1.bf16.msra.mxu1 %v1491_v14  ;;  %v1521_v34 = vld [vmem:[#allocation8 + $0x8] ss:$24 sps:$4 sm:$0xff]   ;;  %v1525_v36 = vld [vmem:[#allocation8 + $0x2dc] ss:$24 sps:$4 sm:$0xff]   ;;  %v1527_v38 = vld [vmem:[#allocation8 + $0x2d8] ss:$24 sps:$4 sm:$0xff]   ;;  %v321_v14 = vlaneseq }
  0x74   : > { %962 = vmatprep.subr.bf16.mxu0 %v1492_v15  ;;  %1003 = vmatprep.subr.bf16.mxu1 %v1495_v16  ;;  %v1528_v39 = vld [vmem:[#allocation8 + $0x2a4] ss:$24 sps:$4 sm:$0xff]   ;;  %v1530_v41 = vld [vmem:[#allocation8 + $0x2a0] ss:$24 sps:$4 sm:$0xff]   ;;  %v1534_v50 = vld [vmem:[#allocation8 + $0x274] ss:$24 sps:$4 sm:$0xff]  }
  0x75   : > { %v1531_v40 = vld [vmem:[#allocation8 + $0x2ac] ss:$24 sps:$4 sm:$0xff]   ;;  %v1533_v49 = vld [vmem:[#allocation8 + $0x2a8] ss:$24 sps:$4 sm:$0xff]   ;;  %v1537_v52 = vld [vmem:[#allocation8 + $0x27c] ss:$24 sps:$4 sm:$0xff]  }
  0x76   : > { %v1536_v51 = vld [vmem:[#allocation8 + $0x270] ss:$24 sps:$4 sm:$0xff]   ;;  %v1540_v54 = vld [vmem:[#allocation8 + $0x244] ss:$24 sps:$4 sm:$0xff]   ;;  %v1542_v55 = vld [vmem:[#allocation8 + $0x240] ss:$24 sps:$4 sm:$0xff]  }
  0x77   : > { %963 = vmatpush1.bf16.msra.mxu0 %v1494_v17  ;;  %1004 = vmatpush1.bf16.msra.mxu1 %v1497_v18  ;;  %v1539_v53 = vld [vmem:[#allocation8 + $0x278] ss:$24 sps:$4 sm:$0xff]   ;;  %v1543_v56 = vld [vmem:[#allocation8 + $0x24c] ss:$24 sps:$4 sm:$0xff]   ;;  %v1545_v57 = vld [vmem:[#allocation8 + $0x248] ss:$24 sps:$4 sm:$0xff]  }
  0x78   : > { %964 = vmatprep.subr.bf16.mxu0 %v1498_v19  ;;  %1005 = vmatprep.subr.bf16.mxu1 %v1501_v20  ;;  %v1546_v58 = vld [vmem:[#allocation8 + $0x214] ss:$24 sps:$4 sm:$0xff]   ;;  %v1548_v60 = vld [vmem:[#allocation8 + $0x210] ss:$24 sps:$4 sm:$0xff]   ;;  %v1552_v62 = vld [vmem:[#allocation8 + $0x1e4] ss:$24 sps:$4 sm:$0xff]  }
  0x79   : > { %v1549_v59 = vld [vmem:[#allocation8 + $0x21c] ss:$24 sps:$4 sm:$0xff]   ;;  %v1551_v61 = vld [vmem:[#allocation8 + $0x218] ss:$24 sps:$4 sm:$0xff]   ;;  %v1555_v63 = vld [vmem:[#allocation8 + $0x1ec] ss:$24 sps:$4 sm:$0xff]  }
  0x7a   : > { %v1558_v2 = vld [vmem:[#allocation8 + $0x1b4] ss:$24 sps:$4 sm:$0xff]   ;;  %v1560_v4 = vld [vmem:[#allocation8 + $0x1b0] ss:$24 sps:$4 sm:$0xff]   ;;  %v1564_v6 = vld [vmem:[#allocation8 + $0x184] ss:$24 sps:$4 sm:$0xff]  }
  0x7b   : > { %965 = vmatpush1.bf16.msra.mxu0 %v1500_v21  ;;  %1006 = vmatpush1.bf16.msra.mxu1 %v1503_v22  ;;  %v1561_v3 = vld [vmem:[#allocation8 + $0x1bc] ss:$24 sps:$4 sm:$0xff]   ;;  %v1563_v5 = vld [vmem:[#allocation8 + $0x1b8] ss:$24 sps:$4 sm:$0xff]   ;;  %v1567_v7 = vld [vmem:[#allocation8 + $0x18c] ss:$24 sps:$4 sm:$0xff]  }
  0x7c   : > { %966 = vmatprep.subr.bf16.mxu0 %v1504_v23  ;;  %1007 = vmatprep.subr.bf16.mxu1 %v1507_v24  ;;  %v1566_v8 = vld [vmem:[#allocation8 + $0x180] ss:$24 sps:$4 sm:$0xff]   ;;  %v1572_v10 = vld [vmem:[#allocation8 + $0x164] ss:$24 sps:$4 sm:$0xff]   ;;  %v2060_v15 = vshrl.u32 %v321_v14, 7  ;;  %s298_s6 = scalar_lea.vmem [#allocation10], %s1360_s30 }
  0x7d   : > { %v1569_v9 = vld [vmem:[#allocation8 + $0x188] ss:$24 sps:$4 sm:$0xff]   ;;  %v301_v18 = vld [vmem:[#allocation5] sm:$0x3]  ;;  %v302_v19 = vld [vmem:[#allocation7] sm:$0x3] }
  0x7e   : > { %v2063_v16 = vsub.s32 1, %v2060_v15  ;;  %v2066_v17 = vsub.s32 0, %v2060_v15  ;;  %s1361_s7 = smul.u32 6, %s1814_s21  ;;  %s1123_s15 = sshll.u32 %s298_s6, 4  ;;  %s1124_s15 = int_to_ptr.vmem [resolvable:$true] %s1123_s15 }
  0x7f   : > { %967 = vmatpush1.bf16.msra.mxu0 %v1506_v25  ;;  %1008 = vmatpush1.bf16.msra.mxu1 %v1509_v26  ;;  %s1362_s9 = smul.u32 12, %s1818_s22  ;;  %s1107_s22 = scalar_lea.sflag [#allocation4], %s2028_s18 }
  0x80   : > { %968 = vmatprep.subr.bf16.mxu0 %v1510_v27  ;;  %1009 = vmatprep.subr.bf16.mxu1 %v1513_v28  ;;  %v328_v20 = vrot.slane %v301_v18, %v2063_v16  ;;  %v324_v21 = vrot.slane %v301_v18, %v2066_v17  ;;  %v341_v24 = vrot.slane %v302_v19, %v2063_v16  ;;  %s1726_s11 = scalar_lea.vmem %s1124_s15, 384  ;;  %s1730_s3 = sshll.u32 %s1838_s26, 4  ;;  %s1731_s3 = int_to_ptr.vmem [resolvable:$false] %s1730_s3 }
  0x81   : > { %v337_v26 = vrot.slane %v302_v19, %v2066_v17  ;;  %s1119_s13 = sadd.s32 %s1362_s9, %s1361_s7  ;;  %p1727_p1 = scmp.ne.s32.totalorder %s1124_s15, %s1726_s11 }
  0x82   : > { %s1354_s29 = sshll.u32 %s1119_s13, 6  ;;  %s1732_s14 = scalar_lea.vmem %s1731_s3, 768 }
  0x83   : > { %969 = vmatpush1.bf16.msra.mxu0 %v1512_v29  ;;  %1010 = vmatpush1.bf16.msra.mxu1 %v1515_v30  ;;  %s2094_s10 = scalar_lea.hbm %s2146_s5, %s1354_s29  ;;  %p1728_p6 = pnand %p1727_p1, %p1991_p13 }
  0x84   : > { %970 = vmatprep.subr.bf16.mxu0 %v1516_v31  ;;  %1011 = vmatprep.subr.bf16.mxu1 %v1519_v32  ;;  %v1570_v32 = vld [vmem:[#allocation8 + $0x160] ss:$24 sps:$4 sm:$0xff]   ;;  %p1733_p4 = scmp.lt.s32.totalorder %s1124_s15, %s1731_s3  ;;  %p1734_p2 = scmp.lt.s32.totalorder %s1732_s14, %s1726_s11 }
  0x85   : > { %p1729_p3 = pneg %p1728_p6 }
  0x86   : > { %p1735_p8 = por %p1734_p2, %p1733_p4 }
  0x87   : > { %971 = vmatpush1.bf16.msra.mxu0 %v1518_v33  ;;  %1012 = vmatpush1.bf16.msra.mxu1 %v1521_v34  ;;  %v1575_v34 = vld [vmem:[#allocation8 + $0x134] ss:$24 sps:$4 sm:$0xff]  }
  0x88   : > { %972 = vmatprep.subr.bf16.mxu0 %v1522_v35  ;;  %1013 = vmatprep.subr.bf16.mxu1 %v1525_v36  ;;  %v1573_v35 = vld [vmem:[#allocation8 + $0x130] ss:$24 sps:$4 sm:$0xff]   ;;  %v1578_v36 = vld [vmem:[#allocation8 + $0x104] ss:$24 sps:$4 sm:$0xff]   ;;  %p1736_p11 = pnand %p1735_p8, %p1729_p3 }
  0x8b   : > { %973 = vmatpush2.bf16.msra.mxu0 %v1524_v37  ;;  %1014 = vmatpush2.bf16.msra.mxu1 %v1527_v38  ;;  %v1576_v37 = vld [vmem:[#allocation8 + $0x100] ss:$24 sps:$4 sm:$0xff]   ;;  %v1581_v38 = vld [vmem:[#allocation8 + $0xd4] ss:$24 sps:$4 sm:$0xff]  }
  0x8c   : > { %974 = vmatprep.subr.bf16.mxu0 %v1528_v39  ;;  %1015 = vmatprep.subr.bf16.mxu1 %v1531_v40  ;;  %v1579_v39 = vld [vmem:[#allocation8 + $0xd0] ss:$24 sps:$4 sm:$0xff]   ;;  %v1584_v40 = vld [vmem:[#allocation8 + $0xa4] ss:$24 sps:$4 sm:$0xff]  }
  0x8f   : > { %975 = vmatpush2.bf16.msra.mxu0 %v1530_v41  ;;  %1016 = vmatpush2.bf16.msra.mxu1 %v1533_v49  ;;  %v1582_v41 = vld [vmem:[#allocation8 + $0xa0] ss:$24 sps:$4 sm:$0xff]  }
  0x90   : > { %976 = vmatprep.subr.bf16.mxu0 %v1534_v50  ;;  %1017 = vmatprep.subr.bf16.mxu1 %v1537_v52  ;;  %v1594_v49 = vld [vmem:[#allocation8 + $0x2e0] ss:$24 sps:$4 sm:$0xff]   ;;  %v1599_v50 = vld [vmem:[#allocation8 + $0x2b4] ss:$24 sps:$4 sm:$0xff]   ;;  %v1602_v52 = vld [vmem:[#allocation8 + $0x284] ss:$24 sps:$4 sm:$0xff]  }
  0x93   : > { %977 = vmatpush2.bf16.msra.mxu0 %v1536_v51  ;;  %1018 = vmatpush2.bf16.msra.mxu1 %v1539_v53  ;;  %v1597_v51 = vld [vmem:[#allocation8 + $0x2b0] ss:$24 sps:$4 sm:$0xff]   ;;  %v1600_v53 = vld [vmem:[#allocation8 + $0x280] ss:$24 sps:$4 sm:$0xff]  }
  0x94   : > { %978 = vmatprep.subr.bf16.mxu0 %v1540_v54  ;;  %1019 = vmatprep.subr.bf16.mxu1 %v1543_v56  ;;  %v1605_v54 = vld [vmem:[#allocation8 + $0x254] ss:$24 sps:$4 sm:$0xff]   ;;  %v1608_v56 = vld [vmem:[#allocation8 + $0x224] ss:$24 sps:$4 sm:$0xff]  }
  0x97   : > { %979 = vmatpush2.bf16.msra.mxu0 %v1542_v55  ;;  %1020 = vmatpush2.bf16.msra.mxu1 %v1545_v57  ;;  %v1603_v55 = vld [vmem:[#allocation8 + $0x250] ss:$24 sps:$4 sm:$0xff]   ;;  %v1606_v57 = vld [vmem:[#allocation8 + $0x220] ss:$24 sps:$4 sm:$0xff]  }
  0x98   : > { %980 = vmatprep.subr.bf16.mxu0 %v1546_v58  ;;  %1021 = vmatprep.subr.bf16.mxu1 %v1549_v59  ;;  %v1611_v58 = vld [vmem:[#allocation8 + $0x1f4] ss:$24 sps:$4 sm:$0xff]   ;;  %v1609_v59 = vld [vmem:[#allocation8 + $0x1f0] ss:$24 sps:$4 sm:$0xff]  }
  0x9b   : > { %981 = vmatpush2.bf16.msra.mxu0 %v1548_v60  ;;  %1022 = vmatpush2.bf16.msra.mxu1 %v1551_v61  ;;  %v1614_v60 = vld [vmem:[#allocation8 + $0x1c4] ss:$24 sps:$4 sm:$0xff]   ;;  %v1612_v61 = vld [vmem:[#allocation8 + $0x1c0] ss:$24 sps:$4 sm:$0xff]  }
  0x9c   : > { %982 = vmatprep.subr.bf16.mxu0 %v1552_v62  ;;  %1023 = vmatprep.subr.bf16.mxu1 %v1555_v63  ;;  %v1617_v62 = vld [vmem:[#allocation8 + $0x194] ss:$24 sps:$4 sm:$0xff]   ;;  %v1615_v63 = vld [vmem:[#allocation8 + $0x190] ss:$24 sps:$4 sm:$0xff]  }
  0xf3   : > { %v305_v42 = vpop.xlane.xlu0 %304 }
  0xf4   : > { %v307_v43 = vmul.f32 0.00390625, %v305_v42  ;;  %v1587_v42 = vld [vmem:[#allocation8 + $0x74] ss:$24 sps:$4 sm:$0xff]  }
  0xf6   : > { %v2051_v44 = vsub.f32 %v2044_v0, %v307_v43  ;;  %v2054_v45 = vsub.f32 %v2046_v1, %v307_v43  ;;  %v1554_v0 = vld [vmem:[#allocation8 + $0x1e0] ss:$24 sps:$4 sm:$0xff]   ;;  %v1585_v43 = vld [vmem:[#allocation8 + $0x70] ss:$24 sps:$4 sm:$0xff]  }
  0xf7   : > { %v1557_v1 = vld [vmem:[#allocation8 + $0x1e8] ss:$24 sps:$4 sm:$0xff]   ;;  %983 = vmatpush2.bf16.msra.mxu0 %v1554_v0  ;;  %v456_v0 = vsub.s32 2, %v2060_v15 }
  0xf8   : > { %v310_v46 = vmul.f32 %v2051_v44, %v2051_v44  ;;  %v311_v47 = vmul.f32 %v2054_v45, %v2054_v45  ;;  %1024 = vmatpush2.bf16.msra.mxu1 %v1557_v1  ;;  %984 = vmatprep.subr.bf16.mxu0 %v1558_v2  ;;  %v460_v1 = vsub.s32 3, %v2060_v15  ;;  %v444_v2 = vld [vmem:[%s2145_s4] sm:$0x3f] }
  0xf9   : > { %1025 = vmatprep.subr.bf16.mxu1 %v1561_v3  ;;  %v449_v3 = vrot.slane %v444_v2, %v2066_v17 }
  0xfa   : > { %v312_v48 = vadd.f32 %v311_v47, %v310_v46  ;;  %v1593_v46 = vld [vmem:[#allocation8 + $0x14] ss:$24 sps:$4 sm:$0xff]   ;;  %v1591_v47 = vld [vmem:[#allocation8 + $0x10] ss:$24 sps:$4 sm:$0xff]  }
  0xfb   : > { %985 = vmatpush2.bf16.msra.mxu0 %v1560_v4  ;;  %v457_v4 = vrot.slane %v444_v2, %v456_v0 }
  0xfc   : > { %313 = vadd.xlane.f32.xlu0 %v312_v48  ;;  %1026 = vmatpush2.bf16.msra.mxu1 %v1563_v5  ;;  %v1596_v48 = vld [vmem:[#allocation8 + $0x2e4] ss:$24 sps:$4 sm:$0xff]   ;;  %v453_v5 = vrot.slane %v444_v2, %v2063_v16  ;;  %v464_v16 = vsub.s32 4, %v2060_v15 }
  0xfd   : > { %986 = vmatprep.subr.bf16.mxu0 %v1564_v6  ;;  %1027 = vmatprep.subr.bf16.mxu1 %v1567_v7  ;;  %v461_v6 = vrot.slane %v444_v2, %v460_v1 }
  0xff   : > { %987 = vmatpush2.bf16.msra.mxu0 %v1566_v8 }
 0x100   : > { %1028 = vmatpush2.bf16.msra.mxu1 %v1569_v9  ;;  %1038 = vmatprep.subr.bf16.mxu0 %v1572_v10 }
 0x185   : > { %v314_v11 = vpop.xlane.xlu0 %313 }
 0x186   : > { %v315_v12 = vmul.f32 0.00390625, %v314_v11 }
 0x188   : > { %v316_v13 = vadd.f32 1e-05, %v315_v12 }
 0x18a   : > { %1618 = vrsqrt.f32 %v316_v13 }
 0x197   : > { %v1619_v22 = vpop.eup %1618 }
 0x198   : > { %v319_v23 = vmul.f32 %v1619_v22, %v2054_v45  ;;  %v318_v25 = vmul.f32 %v1619_v22, %v2051_v44  ;;  %v1590_v44 = vld [vmem:[#allocation8 + $0x44] ss:$24 sps:$4 sm:$0xff]   ;;  %v1588_v45 = vld [vmem:[#allocation8 + $0x40] ss:$24 sps:$4 sm:$0xff]  }
 0x19a   : > { %v332_v27 = vmul.f32 %v328_v20, %v319_v23  ;;  %v331_v28 = vmul.f32 %v324_v21, %v318_v25  ;;  %v468_v23 = vsub.s32 5, %v2060_v15 }
 0x19c   : > { %v345_v29 = vadd.f32 %v341_v24, %v332_v27  ;;  %v344_v30 = vadd.f32 %v337_v26, %v331_v28  ;;  %v465_v24 = vrot.slane %v444_v2, %v464_v16  ;;  %v469_v25 = vrot.slane %v444_v2, %v468_v23 }
 0x19e   : > { %v347_v31 = vpack.c.bf16 %v345_v29, %v345_v29  ;;  %v2074_v33 = vpack.c.bf16 %v344_v30, %v344_v30 }
 0x1a0   : > { %988 = vmatprep.mubr.bf16.mxu0 %v347_v31  ;;  %1029 = vmatprep.mubr.bf16.mxu1 %v347_v31 }
 0x1a1   : > { %989 = vmatmul.mubr.bf16.vlgmr.msra.gmra.mxu0 %v2074_v33  ;;  %1030 = vmatmul.mubr.bf16.vlgmr.msra.gmra.mxu1 %v2074_v33 }
 0x1a2   : > { %1039 = vmatpush1.bf16.msra.mxu0 %v1570_v32  ;;  %1070 = vmatprep.mubr.bf16.mxu0 %v347_v31 }
 0x1a3   : > { %1040 = vmatprep.subr.bf16.mxu0 %v1575_v34 }
 0x1a6   : > { %1041 = vmatpush1.bf16.msra.mxu0 %v1573_v35 }
 0x1a7   : > { %1042 = vmatprep.subr.bf16.mxu0 %v1578_v36 }
 0x1aa   : > { %1043 = vmatpush1.bf16.msra.mxu0 %v1576_v37 }
 0x1ab   : > { %1044 = vmatprep.subr.bf16.mxu0 %v1581_v38 }
 0x1ae   : > { %1045 = vmatpush1.bf16.msra.mxu0 %v1579_v39 }
 0x1af   : > { %1046 = vmatprep.subr.bf16.mxu0 %v1584_v40 }
 0x1b2   : > { %1047 = vmatpush1.bf16.msra.mxu0 %v1582_v41 }
 0x1b3   : > { %1048 = vmatprep.subr.bf16.mxu0 %v1587_v42 }
 0x1b6   : > { %1049 = vmatpush1.bf16.msra.mxu0 %v1585_v43 }
 0x1b7   : > { %1050 = vmatprep.subr.bf16.mxu0 %v1590_v44 }
 0x1ba   : > { %1051 = vmatpush1.bf16.msra.mxu0 %v1588_v45 }
 0x1bb   : > { %1052 = vmatprep.subr.bf16.mxu0 %v1593_v46 }
 0x1be   : > { %1053 = vmatpush1.bf16.msra.mxu0 %v1591_v47 }
 0x1bf   : > { %1054 = vmatprep.subr.bf16.mxu0 %v1596_v48 }
 0x1c2   : > { %1055 = vmatpush2.bf16.msra.mxu0 %v1594_v49 }
 0x1c3   : > { %1056 = vmatprep.subr.bf16.mxu0 %v1599_v50 }
 0x1c6   : > { %1057 = vmatpush2.bf16.msra.mxu0 %v1597_v51 }
 0x1c7   : > { %1058 = vmatprep.subr.bf16.mxu0 %v1602_v52 }
 0x1ca   : > { %1059 = vmatpush2.bf16.msra.mxu0 %v1600_v53 }
 0x1cb   : > { %1060 = vmatprep.subr.bf16.mxu0 %v1605_v54 }
 0x1ce   : > { %1061 = vmatpush2.bf16.msra.mxu0 %v1603_v55 }
 0x1cf   : > { %1062 = vmatprep.subr.bf16.mxu0 %v1608_v56 }
 0x1d2   : > { %1063 = vmatpush2.bf16.msra.mxu0 %v1606_v57 }
 0x1d3   : > { %1064 = vmatprep.subr.bf16.mxu0 %v1611_v58 }
 0x1d6   : > { %1065 = vmatpush2.bf16.msra.mxu0 %v1609_v59 }
 0x1d7   : > { %1066 = vmatprep.subr.bf16.mxu0 %v1614_v60 }
 0x1da   : > { %1067 = vmatpush2.bf16.msra.mxu0 %v1612_v61 }
 0x1db   : > { %1068 = vmatprep.subr.bf16.mxu0 %v1617_v62 }
 0x1de   : > { %1069 = vmatpush2.bf16.msra.mxu0 %v1615_v63 }
 0x1e1   : > { %1071 = vmatmul.mubr.bf16.vlgmr.msra.gmra.mxu0 %v2074_v33 }
 0x261   : > { %v990_v7 = vpop.f32.mrf.mxu0  ;;  %v1031_v8 = vpop.f32.mrf.mxu1 }
 0x262   : > { %v991_v11 = vadd.f32 %v990_v7, %v449_v3  ;;  %v1032_v12 = vadd.f32 %v1031_v8, %v457_v4 }
 0x263   : > { %v992_v9 = vpop.f32.mrf.mxu0  ;;  %v1033_v10 = vpop.f32.mrf.mxu1 }
 0x264   : > { %v993_v13 = vadd.f32 %v992_v9, %v453_v5  ;;  %v1034_v14 = vadd.f32 %v1033_v10, %v461_v6 }
 0x265   : > { %v994_v18 = vpop.f32.mrf.mxu0  ;;  %v1035_v19 = vpop.f32.mrf.mxu1 }
 0x266   : > { %v1357_v20 = vpack.c.bf16 %v993_v13, %v991_v11  ;;  %v1358_v21 = vpack.c.bf16 %v1034_v14, %v1032_v12 }
 0x267   : > { %v995_v17 = vpop.f32.mrf.mxu0  ;;  %v1036_v22 = vpop.f32.mrf.mxu1 }
 0x268   : > { %1103 = vst [vmem:[%s298_s6] sm:$0xff] %v1357_v20  ;;  %1104 = vst [vmem:[%s298_s6 + $0x8] sm:$0xff] %v1358_v21 }
 0x2a1   : > { %v1072_v26 = vpop.f32.mrf.mxu0 }
 0x2a2   : > { %v1073_v28 = vadd.f32 %v1072_v26, %v465_v24 }
 0x2a3   : > { %v1074_v27 = vpop.f32.mrf.mxu0 }
 0x2a4   : > { %v1075_v29 = vadd.f32 %v1074_v27, %v469_v25 }
 0x2a5   : > { %v1076_v30 = vpop.f32.mrf.mxu0 }
 0x2a6   : > { %v1359_v31 = vpack.c.bf16 %v1075_v29, %v1073_v28 }
 0x2a7   : > { %v1077_v15 = vpop.f32.mrf.mxu0 }
 0x2a8   : > { %1105 = vst [vmem:[%s298_s6 + $0x10] sm:$0xff] %v1359_v31 }
 0x2a9   : > { %1739 = shalt.err (!%p1736_p11)
}
 0x2aa   : > { %s1740_s23 = scalar_lea.hbm %s2094_s10, 384  ;;  %s1744_s8 = scalar_lea.hbm %s2146_s5, 1536 }
 0x2ab   : > { %p1741_p5 = scmp.ne.s32.totalorder %s2094_s10, %s1740_s23  ;;  %p1745_p12 = scmp.lt.s32.totalorder %s2094_s10, %s2146_s5 }
 0x2ac   : > { %p1746_p10 = scmp.lt.s32.totalorder %s1744_s8, %s1740_s23 }
 0x2ad   : > { %p1742_p7 = pnand %p1741_p5, %p1991_p13 }
 0x2ae   : > { %p1747_p0 = por %p1746_p10, %p1745_p12 }
 0x2af   : > { %p1743_p9 = pneg %p1742_p7 }
 0x2b1   : > { %p1748_p1 = pnand %p1747_p0, %p1743_p9 }
 0x2b3   : > { %1751 = shalt.err (!%p1748_p1)
}
 0x2b4   : > { %1377 = dma.vmem_to_hbm [thread:$0]  (%p1991_p13), %s1124_s15, 384, %s2094_s10, %s1107_s22  }
 0x2b5 PF: > { %s2178_s30 = sld [smem:[#allocation15_spill]]  ;;  %p1404_p6 = scmp.ge.s32.totalorder %s1830_s25, 2 }
 0x2b6   : > { %s2179_s6 = sld [smem:[#allocation17_spill]] }
 0x2bb   : > { %s1135_s7 = sand.u32 1, %s2178_s30  }
 0x2bc   : > { %p2180_p3 = scmp.ne.s32.totalorder %s2179_s6, 0  ;;  %s1136_s9 = scalar_lea.sflag [#allocation4], %s1135_s7 }
 0x2be   : > { %p1394_p4 = pnand %p1404_p6, %p2180_p3 }
 0x2c0   : > { %p1395_p2 = pneg %p1394_p4 }
 0x2c2   : > { %1797 = dma.done.wait (%p1395_p2), %s1136_s9, 384  }
 0x2c3   : > { %1799 = vsyncadd (%p1395_p2), %s1136_s9, 4294966912  ;;  %s23_s25 = sadd.s32 1, %s1830_s25   ;;  %s2181_s21 = sld [smem:[#allocation16_spill]] }
 0x2c4   : > { %p20_p8 = scmp.ge.s32.totalorder %s23_s25, 6   ;;  %s2182_s23 = sld [smem:[#allocation18_spill]] }
 0x2c5   : > { %s2183_s18 = smov %s1806_s19  ;;  %s2184_s19 = smov %s1810_s20 }
 0x2c6   : > { %s2185_s20 = smov %s2008_s2  ;;  %s2186_s22 = smov %s1826_s24 }
 0x2c7   : > { %s2187_s24 = smov %s2193_s17  ;;  %22 = sbr.rel (!%p20_p8) target bundleno = 13 (0xd), region = 97 }
 0x2cc   :  { %1141 = vsyncpa [#allocation3], 1 }
 0x2cd   :  { %1143 = vsyncpa [#allocation3 + $0x1], 1 }
 0x2ce   :  { %1144 = vsyncpa [#allocation6], 1 }
 0x2cf   :  { %1145 = vsyncpa [#allocation9], 1 }
 0x2d0   :  { %1146 = vsyncpa [#allocation4], 1 }
 0x2d1   :  { %1148 = vsyncpa [#allocation4 + $0x1], 1 }

</bundles_post_ra>
